<compile_context>
chip_gen: v7x
topology: tpu7x:2x2x1
jax: 0.10.0
libtpu: 0.0.40
codegen_flags: <defaults>
</compile_context>

<pallas_src>
import math

import jax
import jax.numpy as jnp
from jax import lax
from jax.experimental import pallas as pl
from jax.experimental.pallas import tpu as pltpu

_SQRT_2_OVER_PI = math.sqrt(2.0 / math.pi)


def _context_pooler_kernel(ctx_ref, w_ref, b_ref, o_ref):
    # ctx_ref: [TB, H_in]   first-token activations
    # w_ref:   [TN, H_in]   nn.Linear weight slab, PyTorch (out, in) layout
    # b_ref:   [1,  TN]     bias slab
    # o_ref:   [TB, TN]     pooled output slab
    # x @ W.T : contract ctx dim 1 against weight dim 1 (no transpose materialized)
    y = lax.dot_general(
        ctx_ref[...], w_ref[...],
        dimension_numbers=(((1,), (1,)), ((), ())),
        preferred_element_type=jnp.float32,
    )
    y = y + b_ref[...].astype(jnp.float32)
    # tanh-approx GELU, identical to the reference `gelu`; y*y*y avoids pow.
    y = 0.5 * y * (1.0 + jnp.tanh(_SQRT_2_OVER_PI * (y + 0.044715 * (y * y * y))))
    o_ref[...] = y.astype(o_ref.dtype)


def context_pooler(hidden_states, weight, bias, *, block_b=None, block_n=None):
    """DeBERTa ContextPooler forward (inference: StableDropout == identity).

    hidden_states: [B, S, H_in]
    weight:        [H_out, H_in]  (PyTorch nn.Linear layout, NOT transposed)
    bias:          [H_out]
    returns:       [B, H_out]
    """
    B, S, H_in = hidden_states.shape
    H_out, H_in_w = weight.shape
    assert H_in_w == H_in and bias.shape == (H_out,)

    # Only the first token is needed: slice before pallas_call so just B*H_in
    # activation bytes (not B*S*H_in) are fetched from HBM.
    ctx = hidden_states[:, 0, :]                    # [B, H_in]
    b2 = bias.reshape(1, H_out)                     # keep bias 2-D for TPU layout

    # Tile sizes: (8,128)-friendly, keep double-buffered slabs under the
    # smallest (v5e, 16 MiB) scoped-VMEM default.
    if block_b is None:
        block_b = B if B <= 256 else 256            # 256 % 8 == 0
    if block_n is None:
        block_n = H_out if H_out <= 1024 else 512   # 512 % 128 == 0
    block_b = min(block_b, B)
    block_n = min(block_n, H_out)

    grid = (pl.cdiv(B, block_b), pl.cdiv(H_out, block_n))

    return pl.pallas_call(
        _context_pooler_kernel,
        out_shape=jax.ShapeDtypeStruct((B, H_out), hidden_states.dtype),
        grid_spec=pltpu.PrefetchScalarGridSpec(
            num_scalar_prefetch=0,
            grid=grid,
            in_specs=[
                pl.BlockSpec((block_b, H_in), lambda i, j: (i, 0)),   # ctx
                pl.BlockSpec((block_n, H_in), lambda i, j: (j, 0)),   # weight slab
                pl.BlockSpec((1, block_n), lambda i, j: (0, j)),      # bias slab
            ],
            out_specs=pl.BlockSpec((block_b, block_n), lambda i, j: (i, j)),
        ),
        compiler_params=pltpu.CompilerParams(
            # No reduction axis: both grid axes are independent -> megacore-shardable.
            dimension_semantics=("parallel", "parallel"),
        ),
    )(ctx, weight, b2)


def _reference(hidden_states, weight, bias):
    ctx = hidden_states[:, 0]
    y = ctx @ weight.T + bias
    return 0.5 * y * (1.0 + jnp.tanh(_SQRT_2_OVER_PI * (y + 0.044715 * (y ** 3))))


if __name__ == "__main__":
    # Small config consistent with the module: batch=4, seq=8, pooler_hidden_size=32.
    B, S, H = 4, 8, 32
    key = jax.random.PRNGKey(0)
    k1, k2, k3 = jax.random.split(key, 3)

    hidden_states = jax.random.normal(k1, (B, S, H), dtype=jnp.float32)
    # deterministic synthetic parameters (PyTorch nn.Linear layout: [out, in])
    weight = jax.random.normal(k2, (H, H), dtype=jnp.float32) * (1.0 / math.sqrt(H))
    bias = jax.random.normal(k3, (H,), dtype=jnp.float32) * 0.02

    out = jax.block_until_ready(context_pooler(hidden_states, weight, bias))
    ref = _reference(hidden_states, weight, bias)

    assert out.shape == (B, H)
    assert jnp.allclose(out, ref, atol=1e-5, rtol=1e-5), "mismatch vs reference"

    print("KERNEL_OK")
</pallas_src>

<mosaic_0001>
module attributes {stable_mosaic.version = 11 : i64} {
  func.func @_context_pooler_kernel(%arg0: i32, %arg1: i32, %arg2: memref<4x32xf32, #tpu.memory_space<vmem>>, %arg3: memref<32x32xf32, #tpu.memory_space<vmem>>, %arg4: memref<1x32xf32, #tpu.memory_space<vmem>>, %arg5: memref<4x32xf32, #tpu.memory_space<vmem>>) attributes {dimension_semantics = [#tpu.dimension_semantics<parallel>, #tpu.dimension_semantics<parallel>], iteration_bounds = array<i64: 1, 1>, scalar_prefetch = 0 : i64, scratch_operands = 0 : i64, tpu.core_type = #tpu.core_type<tc>, window_params = [{transform_indices = @transform_0, window_bounds = array<i64: 4, 32>}, {transform_indices = @transform_1, window_bounds = array<i64: 32, 32>}, {transform_indices = @transform_2, window_bounds = array<i64: 1, 32>}, {transform_indices = @transform_3, window_bounds = array<i64: 4, 32>}]} {
    %c0 = arith.constant 0 : index
    %c0_0 = arith.constant 0 : index
    %0 = vector.load %arg2[%c0, %c0_0] : memref<4x32xf32, #tpu.memory_space<vmem>>, vector<4x32xf32>
    %c0_1 = arith.constant 0 : index
    %c0_2 = arith.constant 0 : index
    %1 = vector.load %arg3[%c0_1, %c0_2] : memref<32x32xf32, #tpu.memory_space<vmem>>, vector<32x32xf32>
    %cst = arith.constant dense<0.000000e+00> : vector<4x32xf32>
    %2 = tpu.matmul %0, %1, %cst {dimension_numbers = #tpu.dot_dimension_numbers<[1], [1], [0], [0], [0, 0, 1, 0], [], []>} : vector<4x32xf32>, vector<32x32xf32>, vector<4x32xf32> -> vector<4x32xf32>
    %c0_3 = arith.constant 0 : index
    %c0_4 = arith.constant 0 : index
    %3 = vector.load %arg4[%c0_3, %c0_4] : memref<1x32xf32, #tpu.memory_space<vmem>>, vector<1x32xf32>
    %4 = vector.broadcast %3 : vector<1x32xf32> to vector<4x32xf32>
    %5 = arith.addf %2, %4 : vector<4x32xf32>
    %cst_5 = arith.constant 5.000000e-01 : f32
    %6 = vector.broadcast %cst_5 : f32 to vector<4x32xf32>
    %7 = arith.mulf %6, %5 : vector<4x32xf32>
    %8 = arith.mulf %5, %5 : vector<4x32xf32>
    %9 = arith.mulf %8, %5 : vector<4x32xf32>
    %cst_6 = arith.constant 4.471500e-02 : f32
    %10 = vector.broadcast %cst_6 : f32 to vector<4x32xf32>
    %11 = arith.mulf %10, %9 : vector<4x32xf32>
    %12 = arith.addf %5, %11 : vector<4x32xf32>
    %cst_7 = arith.constant 0.797884583 : f32
    %13 = vector.broadcast %cst_7 : f32 to vector<4x32xf32>
    %14 = arith.mulf %13, %12 : vector<4x32xf32>
    %15 = math.tanh %14 : vector<4x32xf32>
    %cst_8 = arith.constant 1.000000e+00 : f32
    %16 = vector.broadcast %cst_8 : f32 to vector<4x32xf32>
    %17 = arith.addf %16, %15 : vector<4x32xf32>
    %18 = arith.mulf %7, %17 : vector<4x32xf32>
    %c0_9 = arith.constant 0 : index
    %c0_10 = arith.constant 0 : index
    %19 = vector.load %arg5[%c0_9, %c0_10] : memref<4x32xf32, #tpu.memory_space<vmem>>, vector<4x32xf32>
    tpu.vector_store %arg5[%c0_9, %c0_10], %18 {strides = array<i32>} : memref<4x32xf32, #tpu.memory_space<vmem>>, vector<4x32xf32>,
    return
  }
  func.func @transform_0(%arg0: i32, %arg1: i32) -> (i32, i32) {
    %c0_i32 = arith.constant 0 : i32
    %c0_i32_0 = arith.constant 0 : i32
    return %arg0, %c0_i32 : i32, i32
  }
  func.func @transform_1(%arg0: i32, %arg1: i32) -> (i32, i32) {
    %c0_i32 = arith.constant 0 : i32
    %c0_i32_0 = arith.constant 0 : i32
    return %arg1, %c0_i32 : i32, i32
  }
  func.func @transform_2(%arg0: i32, %arg1: i32) -> (i32, i32) {
    %c0_i32 = arith.constant 0 : i32
    %c0_i32_0 = arith.constant 0 : i32
    return %c0_i32, %arg1 : i32, i32
  }
  func.func @transform_3(%arg0: i32, %arg1: i32) -> (i32, i32) {
    %c0_i32 = arith.constant 0 : i32
    return %arg0, %arg1 : i32, i32
  }
}

</mosaic_0001>

<bundles_post_ra>
// kernel: tpu_custom_call.1
= control target key start
LH: loop header
LB: loop body
LE: loop exit
PB: predicated region body
PF: predicated region fallthrough
CT: control target
= control target key end

     0   :  { %8 = vsyncpa [#allocation3], 0  ;;  %s352_s0 = inlined_call_operand.hbm [shape: f32[4,32], index: 0, kind: input, shape index: {}]   ;;  %s353_s1 = inlined_call_operand.hbm [shape: f32[32,32], index: 1, kind: input, shape index: {}]   ;;  %s354_s2 = inlined_call_operand.vmem [shape: f32[1,32], index: 2, kind: input, shape index: {}]   ;;  %s355_s3 = inlined_call_operand.hbm [shape: f32[4,32], index: 3, kind: output, shape index: {}]  }
   0x1   :  { %9 = vsyncpa [#allocation6], 0 }
   0x2   :  { %10 = vsyncpa [#allocation4], 0  ;;  %s278_s12 = smov [#allocation2]   ;;  %s279_s14 = smov [#allocation5]  }
   0x3   :  { %s17_s13 = sshll.u32 %s278_s12, 4  ;;  %s26_s15 = sshll.u32 %s279_s14, 4  ;;  %s18_s13 = int_to_ptr.vmem [resolvable:$true] %s17_s13  ;;  %s306_s15 = int_to_ptr.vmem [resolvable:$true] %s26_s15 }
   0x4   :  { %s206_s18 = scalar_lea.hbm %s352_s0, 64 }
   0x5   :  { %p207_p0 = scmp.ne.s32.totalorder %s352_s0, %s206_s18  ;;  %p210_p1 = scmp.lt.u32.totalorder %s206_s18, %s352_s0 }
   0x7   :  { %p212_p2 = pnand %p210_p1, %p207_p0 }
   0x9   :  { %215 = shalt.err (!%p212_p2)
}
   0xa   :  { %s216_s23 = scalar_lea.vmem %s18_s13, 64  ;;  %p221_p4 = scmp.lt.s32.totalorder %s18_s13, %s18_s13 }
   0xb   :  { %p217_p3 = scmp.ne.s32.totalorder %s18_s13, %s216_s23  ;;  %p222_p5 = scmp.lt.s32.totalorder %s216_s23, %s216_s23 }
   0xd   :  { %p223_p6 = por %p222_p5, %p221_p4 }
   0xf   :  { %p224_p7 = pnand %p223_p6, %p217_p3 }
  0x11   :  { %227 = shalt.err (!%p224_p7)
}
  0x12   :  { %20 = dma.hbm_to_vmem [thread:$0]  %s352_s0, 64, %s18_s13, [#allocation3]  }
  0x13   :  { %s228_s28 = scalar_lea.hbm %s353_s1, 512 }
  0x14   :  { %p229_p8 = scmp.ne.s32.totalorder %s353_s1, %s228_s28  ;;  %p232_p9 = scmp.lt.u32.totalorder %s228_s28, %s353_s1 }
  0x16   :  { %p234_p10 = pnand %p232_p9, %p229_p8 }
  0x18   :  { %237 = shalt.err (!%p234_p10)
}
  0x19   :  { %s238_s6 = scalar_lea.vmem %s306_s15, 512  ;;  %p243_p12 = scmp.lt.s32.totalorder %s306_s15, %s306_s15 }
  0x1a   :  { %p239_p11 = scmp.ne.s32.totalorder %s306_s15, %s238_s6  ;;  %p244_p13 = scmp.lt.s32.totalorder %s238_s6, %s238_s6 }
  0x1c   :  { %p245_p0 = por %p244_p13, %p243_p12 }
  0x1e   :  { %p246_p1 = pnand %p245_p0, %p239_p11 }
  0x20   :  { %249 = shalt.err (!%p246_p1)
}
  0x21   :  { %s280_s0 = smov 128   ;;  %s281_s7 = smov 8  }
  0x22   :  { %32 = dma.hbm_to_vmem [thread:$0]  %s353_s1, 512, %s306_s15, [#allocation6], %s280_s0, %s280_s0, %s281_s7  }
  0x23   :  { %272 = dma.done.wait [#allocation3], 64  }
  0x24   :  { %273 = vsyncadd [#allocation3], 4294967232 }
  0x25   :  { %274 = dma.done.wait [#allocation6], 512  }
  0x26   :  { %275 = vsyncadd [#allocation6], 4294966784  ;;  %v282_v0 = vmov 0.0|0.0   ;;  %vm283_vm0 = vmmov 0   ;;  %v284_v1 = vmov 0.0   ;;  %vm53_vm1 = vcmask 261120  }
  0x27   :  { %188 = vmatprep.subr.bf16.mxu0 %v282_v0  ;;  %185 = vmatprep.mubr.msk.f32.mxu0 %vm283_vm0, %v284_v1  ;;  %v42_v2 = vld [vmem:[#allocation5] sm:$0xff]  ;;  %v43_v3 = vld [vmem:[#allocation5 + $0x8] sm:$0xff]  ;;  %vm190_vm2 = vmpackc.low %vm53_vm1, %vm53_vm1  ;;  %s285_s11 = smov [#allocation7]   ;;  %vm148_vm3 = vcmask 257024  }
  0x28   :  { %v189_v4 = vpack.c.bf16 %v43_v3, %v42_v2  ;;  %v44_v5 = vld [vmem:[#allocation5 + $0x10] sm:$0xff]  ;;  %v45_v6 = vld [vmem:[#allocation5 + $0x18] sm:$0xff]  ;;  %s156_s12 = sshll.u32 %s285_s11, 4  ;;  %s157_s12 = int_to_ptr.vmem [resolvable:$true] %s156_s12 }
  0x29   :  { %v193_v7 = vpack.c.bf16 %v45_v6, %v44_v5  ;;  %v41_v8 = vld [vmem:[#allocation2] sm:$0xf]  ;;  %s250_s13 = scalar_lea.vmem %s157_s12, 64  ;;  %p255_p3 = scmp.lt.s32.totalorder %s157_s12, %s157_s12 }
  0x2a   :  { %191 = vmatpush3.bf16.xpose.msk.msra.mxu0 %vm190_vm2, %v189_v4  ;;  %v166_v9 = vld [vmem:[%s354_s2] ss:$0 sm:$0xff]  ;;  %p251_p2 = scmp.ne.s32.totalorder %s157_s12, %s250_s13  ;;  %p256_p4 = scmp.lt.s32.totalorder %s250_s13, %s250_s13 }
  0x2b   :  { %192 = vmatprep.subr.bf16.mxu0 %v282_v0 }
  0x2c   :  { %p257_p5 = por %p256_p4, %p255_p3 }
  0x2e   :  { %p258_p6 = pnand %p257_p5, %p251_p2 }
  0x32   :  { %195 = vmatpush3.bf16.xpose.msk.msra.mxu0 %vm190_vm2, %v193_v7 }
  0x39   :  { %186 = vmatmul.mubr.msk.f32.vlgmr.msra.gmra.mrb[0].mxu0 %vm53_vm1, %v41_v8 }
 0x10c   :  { %v135_v10 = vpop.f32.mrb[0].mxu0 }
 0x10d   :  { %v136_v11 = vadd.f32 %v166_v9, %v135_v10  ;;  %v187_v12 = vpop.f32.mrb[1].mxu0 }
 0x10f   :  { %v140_v13 = vmul.f32 %v136_v11, %v136_v11  ;;  %v139_v19 = vmul.f32 0.5, %v136_v11 }
 0x111   :  { %v141_v14 = vmul.f32 %v140_v13, %v136_v11 }
 0x113   :  { %v142_v15 = vmul.f32 0.044715, %v141_v14 }
 0x115   :  { %v143_v16 = vadd.f32 %v142_v15, %v136_v11 }
 0x117   :  { %v144_v17 = vmul.f32 0.7978846, %v143_v16 }
 0x119   :  { %204 = vtanh.f32 %v144_v17 }
 0x123   :  { %v205_v18 = vpop.eup %204 }
 0x124   :  { %v146_v20 = vadd.f32 1.0, %v205_v18 }
 0x126   :  { %v147_v21 = vmul.f32 %v146_v20, %v139_v19 }
 0x128   :  { %149 = vst.msk [vmem:[#allocation7] sm:$0xf] %vm148_vm3, %v147_v21 }
 0x129   :  { %261 = shalt.err (!%p258_p6)
}
 0x12a   :  { %s262_s15 = scalar_lea.hbm %s355_s3, 64 }
 0x12b   :  { %p263_p7 = scmp.ne.s32.totalorder %s355_s3, %s262_s15  ;;  %p266_p8 = scmp.lt.u32.totalorder %s262_s15, %s355_s3 }
 0x12d   :  { %p268_p9 = pnand %p266_p8, %p263_p7 }
 0x12f   :  { %271 = shalt.err (!%p268_p9)
}
 0x130   :  { %159 = dma.vmem_to_hbm [thread:$0]  %s157_s12, 64, %s355_s3, [#allocation4]  }
 0x131   :  { %276 = dma.done.wait [#allocation4], 64  }
 0x132   :  { %277 = vsyncadd [#allocation4], 4294967232 }
 0x133   :  { %163 = vsyncpa [#allocation3], 1 }
 0x134   :  { %164 = vsyncpa [#allocation6], 1 }
 0x135   :  { %165 = vsyncpa [#allocation4], 1 }

</bundles_post_ra>
